<compile_context>
chip_gen: v7x
topology: tpu7x:2x2x1
jax: 0.10.0
libtpu: 0.0.40
codegen_flags: <defaults>
</compile_context>

<pallas_src>
import functools

import jax
import jax.numpy as jnp
from jax.experimental import pallas as pl
from jax.experimental.pallas import tpu as pltpu


_CHUNK_ROWS = 8     # sublane rows processed per inner-loop step (f32 vreg height)
_LANES = 128        # lane width


def _wce_kernel(x_ref, t_ref, psum_ref, nll_ref, cnt_ref, *,
                num_classes, ignore_index, m_valid, rows_tile,
                tiles_per_split, ragged):
    """One grid step. For the (sample, split, row-tile) block, accumulate per
    class c and per (sublane, lane) slot:
        psum[c] += softmax(x)[c, m]                  (all real positions m)
        nll[c]  += -log_softmax(x)[c, m]             where t_m == c, t_m != ignore
        cnt[c]  += 1                                 where t_m == c, t_m != ignore
    """
    split = pl.program_id(1)
    i = pl.program_id(2)

    @pl.when(i == 0)
    def _():
        psum_ref[...] = jnp.zeros_like(psum_ref)
        nll_ref[...] = jnp.zeros_like(nll_ref)
        cnt_ref[...] = jnp.zeros_like(cnt_ref)

    tile_idx = split * tiles_per_split + i          # global row-tile index
    row0 = tile_idx * rows_tile                     # first global 128-lane row
    n_chunks = rows_tile // _CHUNK_ROWS
    C = num_classes

    def run_tile(masked):
        def chunk_body(k, carry):
            ps, nl, ct = carry
            r = pl.multiple_of(k * _CHUNK_ROWS, _CHUNK_ROWS)
            x = x_ref[:, pl.ds(r, _CHUNK_ROWS), :].astype(jnp.float32)  # (C,8,128)
            t = t_ref[:, pl.ds(r, _CHUNK_ROWS), :]                      # (1,8,128)

            if masked:
                # Global position of every element of the chunk (cold path only).
                row = jax.lax.broadcasted_iota(
                    jnp.int32, (1, _CHUNK_ROWS, _LANES), 1)
                lane = jax.lax.broadcasted_iota(
                    jnp.int32, (1, _CHUNK_ROWS, _LANES), 2)
                pos = (row0 + k * _CHUNK_ROWS + row) * _LANES + lane
                in_range = pos < m_valid
                x = jnp.where(in_range, x, 0.0)     # sanitize padded/garbage lanes

            # Shared softmax / log-softmax over the channel (major) axis:
            # with the dense layout these are C-1 plain VPU max/add chains.
            xm = jnp.max(x, axis=0, keepdims=True)              # (1,8,128)
            xs = x - xm
            e = jnp.exp(xs)                                     # EUP
            se = jnp.sum(e, axis=0, keepdims=True)              # (1,8,128)
            # Reciprocal on the EUP + one Newton step (keeps ~f32 accuracy
            # needed by the class-weight sums).
            r_inv = pl.reciprocal(se, approx=True)
            r_inv = r_inv * (2.0 - se * r_inv)
            log_se = jnp.log(se)                                # EUP

            valid = t != ignore_index
            if masked:
                r_inv = jnp.where(in_range, r_inv, 0.0)         # kills OOB psum terms
                valid = jnp.logical_and(valid, in_range)

            ch = jax.lax.broadcasted_iota(jnp.int32, (C, _CHUNK_ROWS, _LANES), 0)
            sel_f = jnp.logical_and(ch == t, valid).astype(jnp.float32)

            ps = ps + e * r_inv                 # softmax probabilities
            nl = nl + sel_f * (log_se - xs)     # -log_softmax at the target class
            ct = ct + sel_f                     # per-class valid count
            return ps, nl, ct

        zero = jnp.zeros((C, _CHUNK_ROWS, _LANES), jnp.float32)
        ps, nl, ct = jax.lax.fori_loop(
            0, n_chunks, chunk_body, (zero, zero, zero),
            unroll=max(1, min(8, n_chunks)))
        # One VMEM read-modify-write per tile (not per chunk).
        psum_ref[...] += ps
        nll_ref[...] += nl
        cnt_ref[...] += ct

    if not ragged:
        # Statically mask-free: the whole padded extent is real data.
        run_tile(masked=False)
    else:
        tile_full = (row0 + rows_tile) * _LANES <= m_valid

        @pl.when(tile_full)
        def _():
            run_tile(masked=False)          # hot path: no iota, no selects

        @pl.when(jnp.logical_not(tile_full))
        def _():
            run_tile(masked=True)           # cold path: last (ragged) tile only


@functools.partial(jax.jit, static_argnames=("ignore_index", "tile_rows"))
def weighted_cross_entropy_loss(logits, target, ignore_index=-1, tile_rows=None):
    """Fused Pallas implementation of unet3d WeightedCrossEntropyLoss.forward.

    logits: (N, C, D, H, W) float array ; target: (N, D, H, W) int array.
    NOTE: target is widened to int32; unsigned label dtypes would make
    ignore_index=-1 unmatchable (same as in the PyTorch module).
    """
    N, C = int(logits.shape[0]), int(logits.shape[1])
    Ms = 1
    for d in logits.shape[2:]:
        Ms *= int(d)

    # Flatten spatial dims (free reshape).  Keep the logits dtype: the kernel
    # casts each chunk to f32 after load (no wrapper-side upcast pass).
    x = logits.reshape(N, C, Ms)
    t = target.reshape(N, 1, Ms).astype(jnp.int32)

    # Pad the flattened spatial axis to a multiple of 8*128 so it can be
    # viewed as dense (rows, 128) vregs.  Typical UNet volumes are already a
    # multiple of 1024, so this is usually a no-op (no HBM copy).
    quantum = _CHUNK_ROWS * _LANES
    m_pad = ((Ms + quantum - 1) // quantum) * quantum
    if m_pad != Ms:
        x = jnp.pad(x, ((0, 0), (0, 0), (0, m_pad - Ms)))
        t = jnp.pad(t, ((0, 0), (0, 0), (0, m_pad - Ms)),
                    constant_values=ignore_index)
    rows_total = m_pad // _LANES                  # multiple of _CHUNK_ROWS

    # Spatial positions on the sublane/lane axes; channels on the short major
    # axis so the channel softmax reduction is pure VPU work.
    x = x.reshape(N, C, rows_total, _LANES)
    t = t.reshape(N, 1, rows_total, _LANES)

    # Tile size: ~4 MiB of logits per block (amortizes per-grid-step overhead;
    # the chunked inner loop keeps temporaries in vregs so only the
    # double-buffered input blocks occupy VMEM).
    itemsize = jnp.dtype(x.dtype).itemsize
    if tile_rows is None:
        tile_rows = (4 << 20) // (C * _LANES * itemsize)
    tile_rows = max(_CHUNK_ROWS,
                    (min(int(tile_rows), 4096) // _CHUNK_ROWS) * _CHUNK_ROWS)
    tile_rows = min(tile_rows, rows_total)
    n_tiles = pl.cdiv(rows_total, tile_rows)

    # Split the spatial tiles across a second "parallel" grid axis so both
    # v7x TensorCores get work even when N == 1 (harmless on v5e/v6e).
    n_split = 2 if (n_tiles % 2 == 0 and n_tiles >= 2) else 1
    tiles_per_split = n_tiles // n_split

    # Does any tile contain positions past the true spatial extent?
    ragged = n_tiles * tile_rows * _LANES > Ms

    x_block_bytes = C * tile_rows * _LANES * itemsize
    t_block_bytes = tile_rows * _LANES * 4
    vmem_limit = int(min(max(2 * (x_block_bytes + t_block_bytes) + (8 << 20),
                             32 << 20), 56 << 20))

    acc_shape = jax.ShapeDtypeStruct((N * n_split, C, _CHUNK_ROWS, _LANES),
                                     jnp.float32)
    kernel = functools.partial(
        _wce_kernel, num_classes=C, ignore_index=ignore_index, m_valid=Ms,
        rows_tile=tile_rows, tiles_per_split=tiles_per_split, ragged=ragged)

    psum, nll, cnt = pl.pallas_call(
        kernel,
        out_shape=(acc_shape, acc_shape, acc_shape),
        grid=(N, n_split, tiles_per_split),
        in_specs=[
            pl.BlockSpec((None, C, tile_rows, _LANES),
                         lambda n, p, i: (n, 0, p * tiles_per_split + i, 0)),
            pl.BlockSpec((None, 1, tile_rows, _LANES),
                         lambda n, p, i: (n, 0, p * tiles_per_split + i, 0)),
        ],
        out_specs=(
            pl.BlockSpec((None, C, _CHUNK_ROWS, _LANES),
                         lambda n, p, i: (n * n_split + p, 0, 0, 0)),
            pl.BlockSpec((None, C, _CHUNK_ROWS, _LANES),
                         lambda n, p, i: (n * n_split + p, 0, 0, 0)),
            pl.BlockSpec((None, C, _CHUNK_ROWS, _LANES),
                         lambda n, p, i: (n * n_split + p, 0, 0, 0)),
        ),
        compiler_params=pltpu.CompilerParams(
            dimension_semantics=("parallel", "parallel", "arbitrary"),
            vmem_limit_bytes=vmem_limit),
    )(x, t)

    # Tiny (C,)-sized glue: class weights + weighted-mean combine.
    p_sum = jnp.sum(psum, axis=(0, 2, 3))       # sum_m softmax(x)[c, m]
    nll_c = jnp.sum(nll, axis=(0, 2, 3))        # sum of -logp over {t == c, valid}
    cnt_c = jnp.sum(cnt, axis=(0, 2, 3))        # valid count per class

    # sum_c p_sum[c] == number of positions exactly (avoids f32(M) rounding).
    total = jnp.sum(p_sum)
    class_w = (total - p_sum) / p_sum           # (1 - p).sum(-1) / p.sum(-1)

    numer = jnp.sum(class_w * nll_c)            # sum_m w[t_m] * (-logp[t_m, m])
    denom = jnp.sum(class_w * cnt_c)            # sum_m w[t_m]
    return numer / denom


def _reference(logits, target, ignore_index=-1):
    """Pure-JAX reference matching the PyTorch module."""
    C = logits.shape[1]
    x = jnp.moveaxis(logits, 1, 0).reshape(C, -1).astype(jnp.float32)
    p = jax.nn.softmax(x, axis=0)
    class_w = (1.0 - p).sum(-1) / p.sum(-1)
    logp = jax.nn.log_softmax(x, axis=0)
    t = target.reshape(-1)
    valid = t != ignore_index
    t_safe = jnp.where(valid, t, 0)
    picked = logp[t_safe, jnp.arange(t.shape[0])]
    wt = class_w[t_safe]
    num = jnp.sum(jnp.where(valid, -picked * wt, 0.0))
    den = jnp.sum(jnp.where(valid, wt, 0.0))
    return num / den


if __name__ == "__main__":
    key = jax.random.PRNGKey(0)
    k1, k2, k3, k4, k5, k6 = jax.random.split(key, 6)

    # Case 1: small volume, spatial size not a multiple of 8*128 -> padded,
    # single ragged tile (masked cold path only).
    N, C, D, H, W = 2, 4, 4, 8, 8
    logits = jax.random.normal(k1, (N, C, D, H, W), dtype=jnp.float32)
    target = jax.random.randint(k2, (N, D, H, W), -1, C, dtype=jnp.int32)
    loss = jax.block_until_ready(weighted_cross_entropy_loss(logits, target))
    ref = jax.block_until_ready(_reference(logits, target))
    assert jnp.allclose(loss, ref, rtol=1e-4, atol=1e-5), (loss, ref)

    # Case 2: odd C, two row-tiles split across the extra parallel grid axis;
    # first tile takes the unmasked hot path, last tile is ragged (cold path).
    N, C, D, H, W = 2, 3, 8, 8, 17
    logits = jax.random.normal(k3, (N, C, D, H, W), dtype=jnp.float32)
    target = jax.random.randint(k4, (N, D, H, W), -1, C, dtype=jnp.int32)
    loss = jax.block_until_ready(
        weighted_cross_entropy_loss(logits, target, tile_rows=8))
    ref = jax.block_until_ready(_reference(logits, target))
    assert jnp.allclose(loss, ref, rtol=1e-4, atol=1e-5), (loss, ref)

    # Case 3: exactly aligned volume -> no padding, statically mask-free hot
    # path, multiple chunks in the inner fori_loop.
    N, C, D, H, W = 1, 4, 8, 16, 16
    logits = jax.random.normal(k5, (N, C, D, H, W), dtype=jnp.float32)
    target = jax.random.randint(k6, (N, D, H, W), -1, C, dtype=jnp.int32)
    loss = jax.block_until_ready(weighted_cross_entropy_loss(logits, target))
    ref = jax.block_until_ready(_reference(logits, target))
    assert jnp.allclose(loss, ref, rtol=1e-4, atol=1e-5), (loss, ref)

    print("KERNEL_OK")
</pallas_src>

<mosaic_0001>
module attributes {stable_mosaic.version = 11 : i64} {
  func.func @_wce_kernel(%arg0: i32, %arg1: i32, %arg2: i32, %arg3: memref<1x4x8x128xf32, #tpu.memory_space<vmem>>, %arg4: memref<1x1x8x128xi32, #tpu.memory_space<vmem>>, %arg5: memref<1x4x8x128xf32, #tpu.memory_space<vmem>>, %arg6: memref<1x4x8x128xf32, #tpu.memory_space<vmem>>, %arg7: memref<1x4x8x128xf32, #tpu.memory_space<vmem>>) attributes {dimension_semantics = [#tpu.dimension_semantics<parallel>, #tpu.dimension_semantics<parallel>, #tpu.dimension_semantics<arbitrary>], iteration_bounds = array<i64: 2, 1, 1>, scalar_prefetch = 0 : i64, scratch_operands = 0 : i64, tpu.core_type = #tpu.core_type<tc>, window_params = [{transform_indices = @transform_0, window_bounds = array<i64: 1, 4, 8, 128>}, {transform_indices = @transform_1, window_bounds = array<i64: 1, 1, 8, 128>}, {transform_indices = @transform_2, window_bounds = array<i64: 1, 4, 8, 128>}, {transform_indices = @transform_3, window_bounds = array<i64: 1, 4, 8, 128>}, {transform_indices = @transform_4, window_bounds = array<i64: 1, 4, 8, 128>}]} {
    %c0_i32 = arith.constant 0 : i32
    %0 = arith.cmpi eq, %arg2, %c0_i32 : i32
    %1 = arith.extui %0 : i1 to i32
    %c0_i32_0 = arith.constant 0 : i32
    %2 = arith.cmpi ne, %1, %c0_i32_0 : i32
    scf.if %2 {
      %cst = arith.constant 0.000000e+00 : f32
      %14 = vector.broadcast %cst : f32 to vector<4x8x128xf32>
      %c0 = arith.constant 0 : index
      %c0_4 = arith.constant 0 : index
      %c0_5 = arith.constant 0 : index
      %c0_6 = arith.constant 0 : index
      %15 = vector.load %arg5[%c0, %c0_4, %c0_5, %c0_6] : memref<1x4x8x128xf32, #tpu.memory_space<vmem>>, vector<1x4x8x128xf32>
      %16 = vector.shape_cast %15 : vector<1x4x8x128xf32> to vector<4x8x128xf32>
      %17 = vector.shape_cast %14 : vector<4x8x128xf32> to vector<1x4x8x128xf32>
      tpu.vector_store %arg5[%c0, %c0_4, %c0_5, %c0_6], %17 {strides = array<i32>} : memref<1x4x8x128xf32, #tpu.memory_space<vmem>>, vector<1x4x8x128xf32>,
      %cst_7 = arith.constant 0.000000e+00 : f32
      %18 = vector.broadcast %cst_7 : f32 to vector<4x8x128xf32>
      %c0_8 = arith.constant 0 : index
      %c0_9 = arith.constant 0 : index
      %c0_10 = arith.constant 0 : index
      %c0_11 = arith.constant 0 : index
      %19 = vector.load %arg6[%c0_8, %c0_9, %c0_10, %c0_11] : memref<1x4x8x128xf32, #tpu.memory_space<vmem>>, vector<1x4x8x128xf32>
      %20 = vector.shape_cast %19 : vector<1x4x8x128xf32> to vector<4x8x128xf32>
      %21 = vector.shape_cast %18 : vector<4x8x128xf32> to vector<1x4x8x128xf32>
      tpu.vector_store %arg6[%c0_8, %c0_9, %c0_10, %c0_11], %21 {strides = array<i32>} : memref<1x4x8x128xf32, #tpu.memory_space<vmem>>, vector<1x4x8x128xf32>,
      %cst_12 = arith.constant 0.000000e+00 : f32
      %22 = vector.broadcast %cst_12 : f32 to vector<4x8x128xf32>
      %c0_13 = arith.constant 0 : index
      %c0_14 = arith.constant 0 : index
      %c0_15 = arith.constant 0 : index
      %c0_16 = arith.constant 0 : index
      %23 = vector.load %arg7[%c0_13, %c0_14, %c0_15, %c0_16] : memref<1x4x8x128xf32, #tpu.memory_space<vmem>>, vector<1x4x8x128xf32>
      %24 = vector.shape_cast %23 : vector<1x4x8x128xf32> to vector<4x8x128xf32>
      %25 = vector.shape_cast %22 : vector<4x8x128xf32> to vector<1x4x8x128xf32>
      tpu.vector_store %arg7[%c0_13, %c0_14, %c0_15, %c0_16], %25 {strides = array<i32>} : memref<1x4x8x128xf32, #tpu.memory_space<vmem>>, vector<1x4x8x128xf32>,
    } else {
    }
    %c1_i32 = arith.constant 1 : i32
    %3 = arith.muli %arg1, %c1_i32 : i32
    %4 = arith.addi %3, %arg2 : i32
    %c8_i32 = arith.constant 8 : i32
    %5 = arith.muli %4, %c8_i32 : i32
    %c8_i32_1 = arith.constant 8 : i32
    %6 = arith.addi %5, %c8_i32_1 : i32
    %c128_i32 = arith.constant 128 : i32
    %7 = arith.muli %6, %c128_i32 : i32
    %c256_i32 = arith.constant 256 : i32
    %8 = arith.cmpi sle, %7, %c256_i32 : i32
    %9 = arith.extui %8 : i1 to i32
    %c0_i32_2 = arith.constant 0 : i32
    %10 = arith.cmpi ne, %9, %c0_i32_2 : i32
    scf.if %10 {
      %cst = arith.constant 0.000000e+00 : f32
      %14 = vector.broadcast %cst : f32 to vector<4x8x128xf32>
      %c0_i32_4 = arith.constant 0 : i32
      %c8_i32_5 = arith.constant 8 : i32
      %15 = arith.muli %c0_i32_4, %c8_i32_5 : i32
      %16 = tpu.assume_multiple %15, 8 : i32
      %c0 = arith.constant 0 : index
      %c0_6 = arith.constant 0 : index
      %17 = arith.index_cast %16 : i32 to index
      %c0_7 = arith.constant 0 : index
      %18 = vector.load %arg3[%c0, %c0_6, %17, %c0_7] : memref<1x4x8x128xf32, #tpu.memory_space<vmem>>, vector<1x4x8x128xf32>
      %19 = vector.shape_cast %18 : vector<1x4x8x128xf32> to vector<4x8x128xf32>
      %c0_8 = arith.constant 0 : index
      %c0_9 = arith.constant 0 : index
      %20 = arith.index_cast %16 : i32 to index
      %c0_10 = arith.constant 0 : index
      %21 = vector.load %arg4[%c0_8, %c0_9, %20, %c0_10] : memref<1x1x8x128xi32, #tpu.memory_space<vmem>>, vector<1x1x8x128xi32>
      %22 = vector.shape_cast %21 : vector<1x1x8x128xi32> to vector<1x8x128xi32>
      %cst_11 = arith.constant dense<0xFF800000> : vector<8x128xf32>
      %23 = vector.multi_reduction <maximumf>, %19, %cst_11 [0] : vector<4x8x128xf32> to vector<8x128xf32>
      %24 = vector.shape_cast %23 : vector<8x128xf32> to vector<1x8x128xf32>
      %25 = vector.broadcast %24 : vector<1x8x128xf32> to vector<4x8x128xf32>
      %26 = arith.subf %19, %25 : vector<4x8x128xf32>
      %27 = math.exp %26 : vector<4x8x128xf32>
      %cst_12 = arith.constant dense<0.000000e+00> : vector<8x128xf32>
      %28 = vector.multi_reduction <add>, %27, %cst_12 [0] : vector<4x8x128xf32> to vector<8x128xf32>
      %29 = vector.shape_cast %28 : vector<8x128xf32> to vector<1x8x128xf32>
      %30 = tpu.reciprocal %29 {approx = true} : vector<1x8x128xf32> -> vector<1x8x128xf32>
      %31 = arith.mulf %29, %30 : vector<1x8x128xf32>
      %cst_13 = arith.constant 2.000000e+00 : f32
      %32 = vector.broadcast %cst_13 : f32 to vector<1x8x128xf32>
      %33 = arith.subf %32, %31 : vector<1x8x128xf32>
      %34 = arith.mulf %30, %33 : vector<1x8x128xf32>
      %35 = math.log %29 : vector<1x8x128xf32>
      %c-1_i32 = arith.constant -1 : i32
      %36 = vector.broadcast %c-1_i32 : i32 to vector<1x8x128xi32>
      %37 = arith.cmpi ne, %22, %36 : vector<1x8x128xi32>
      %38 = tpu.iota {dimensions = array<i32: 0>} : vector<4x8x128xi32>
      %39 = vector.broadcast %22 : vector<1x8x128xi32> to vector<4x8x128xi32>
      %40 = arith.cmpi eq, %38, %39 : vector<4x8x128xi32>
      %41 = vector.broadcast %37 : vector<1x8x128xi1> to vector<4x8x128xi1>
      %42 = arith.andi %40, %41 : vector<4x8x128xi1>
      %43 = arith.extui %42 : vector<4x8x128xi1> to vector<4x8x128xi32>
      %44 = arith.sitofp %43 : vector<4x8x128xi32> to vector<4x8x128xf32>
      %45 = vector.broadcast %34 : vector<1x8x128xf32> to vector<4x8x128xf32>
      %46 = arith.mulf %27, %45 : vector<4x8x128xf32>
      %47 = arith.addf %14, %46 : vector<4x8x128xf32>
      %48 = vector.broadcast %35 : vector<1x8x128xf32> to vector<4x8x128xf32>
      %49 = arith.subf %48, %26 : vector<4x8x128xf32>
      %50 = arith.mulf %44, %49 : vector<4x8x128xf32>
      %51 = arith.addf %14, %50 : vector<4x8x128xf32>
      %52 = arith.addf %14, %44 : vector<4x8x128xf32>
      %c1_i32_14 = arith.constant 1 : i32
      %c0_15 = arith.constant 0 : index
      %c0_16 = arith.constant 0 : index
      %c0_17 = arith.constant 0 : index
      %c0_18 = arith.constant 0 : index
      %53 = vector.load %arg5[%c0_15, %c0_16, %c0_17, %c0_18] : memref<1x4x8x128xf32, #tpu.memory_space<vmem>>, vector<1x4x8x128xf32>
      %54 = vector.shape_cast %53 : vector<1x4x8x128xf32> to vector<4x8x128xf32>
      %55 = arith.addf %54, %47 : vector<4x8x128xf32>
      %c0_19 = arith.constant 0 : index
      %c0_20 = arith.constant 0 : index
      %c0_21 = arith.constant 0 : index
      %c0_22 = arith.constant 0 : index
      %56 = vector.load %arg5[%c0_19, %c0_20, %c0_21, %c0_22] : memref<1x4x8x128xf32, #tpu.memory_space<vmem>>, vector<1x4x8x128xf32>
      %57 = vector.shape_cast %56 : vector<1x4x8x128xf32> to vector<4x8x128xf32>
      %58 = vector.shape_cast %55 : vector<4x8x128xf32> to vector<1x4x8x128xf32>
      tpu.vector_store %arg5[%c0_19, %c0_20, %c0_21, %c0_22], %58 {strides = array<i32>} : memref<1x4x8x128xf32, #tpu.memory_space<vmem>>, vector<1x4x8x128xf32>,
      %c0_23 = arith.constant 0 : index
      %c0_24 = arith.constant 0 : index
      %c0_25 = arith.constant 0 : index
      %c0_26 = arith.constant 0 : index
      %59 = vector.load %arg6[%c0_23, %c0_24, %c0_25, %c0_26] : memref<1x4x8x128xf32, #tpu.memory_space<vmem>>, vector<1x4x8x128xf32>
      %60 = vector.shape_cast %59 : vector<1x4x8x128xf32> to vector<4x8x128xf32>
      %61 = arith.addf %60, %51 : vector<4x8x128xf32>
      %c0_27 = arith.constant 0 : index
      %c0_28 = arith.constant 0 : index
      %c0_29 = arith.constant 0 : index
      %c0_30 = arith.constant 0 : index
      %62 = vector.load %arg6[%c0_27, %c0_28, %c0_29, %c0_30] : memref<1x4x8x128xf32, #tpu.memory_space<vmem>>, vector<1x4x8x128xf32>
      %63 = vector.shape_cast %62 : vector<1x4x8x128xf32> to vector<4x8x128xf32>
      %64 = vector.shape_cast %61 : vector<4x8x128xf32> to vector<1x4x8x128xf32>
      tpu.vector_store %arg6[%c0_27, %c0_28, %c0_29, %c0_30], %64 {strides = array<i32>} : memref<1x4x8x128xf32, #tpu.memory_space<vmem>>, vector<1x4x8x128xf32>,
      %c0_31 = arith.constant 0 : index
      %c0_32 = arith.constant 0 : index
      %c0_33 = arith.constant 0 : index
      %c0_34 = arith.constant 0 : index
      %65 = vector.load %arg7[%c0_31, %c0_32, %c0_33, %c0_34] : memref<1x4x8x128xf32, #tpu.memory_space<vmem>>, vector<1x4x8x128xf32>
      %66 = vector.shape_cast %65 : vector<1x4x8x128xf32> to vector<4x8x128xf32>
      %67 = arith.addf %66, %52 : vector<4x8x128xf32>
      %c0_35 = arith.constant 0 : index
      %c0_36 = arith.constant 0 : index
      %c0_37 = arith.constant 0 : index
      %c0_38 = arith.constant 0 : index
      %68 = vector.load %arg7[%c0_35, %c0_36, %c0_37, %c0_38] : memref<1x4x8x128xf32, #tpu.memory_space<vmem>>, vector<1x4x8x128xf32>
      %69 = vector.shape_cast %68 : vector<1x4x8x128xf32> to vector<4x8x128xf32>
      %70 = vector.shape_cast %67 : vector<4x8x128xf32> to vector<1x4x8x128xf32>
      tpu.vector_store %arg7[%c0_35, %c0_36, %c0_37, %c0_38], %70 {strides = array<i32>} : memref<1x4x8x128xf32, #tpu.memory_space<vmem>>, vector<1x4x8x128xf32>,
    } else {
    }
    %true = arith.constant true
    %11 = arith.xori %8, %true : i1
    %12 = arith.extui %11 : i1 to i32
    %c0_i32_3 = arith.constant 0 : i32
    %13 = arith.cmpi ne, %12, %c0_i32_3 : i32
    scf.if %13 {
      %cst = arith.constant 0.000000e+00 : f32
      %14 = vector.broadcast %cst : f32 to vector<4x8x128xf32>
      %c0_i32_4 = arith.constant 0 : i32
      %c8_i32_5 = arith.constant 8 : i32
      %15 = arith.muli %c0_i32_4, %c8_i32_5 : i32
      %16 = tpu.assume_multiple %15, 8 : i32
      %c0 = arith.constant 0 : index
      %c0_6 = arith.constant 0 : index
      %17 = arith.index_cast %16 : i32 to index
      %c0_7 = arith.constant 0 : index
      %18 = vector.load %arg3[%c0, %c0_6, %17, %c0_7] : memref<1x4x8x128xf32, #tpu.memory_space<vmem>>, vector<1x4x8x128xf32>
      %19 = vector.shape_cast %18 : vector<1x4x8x128xf32> to vector<4x8x128xf32>
      %c0_8 = arith.constant 0 : index
      %c0_9 = arith.constant 0 : index
      %20 = arith.index_cast %16 : i32 to index
      %c0_10 = arith.constant 0 : index
      %21 = vector.load %arg4[%c0_8, %c0_9, %20, %c0_10] : memref<1x1x8x128xi32, #tpu.memory_space<vmem>>, vector<1x1x8x128xi32>
      %22 = vector.shape_cast %21 : vector<1x1x8x128xi32> to vector<1x8x128xi32>
      %23 = tpu.iota {dimensions = array<i32: 1>} : vector<1x8x128xi32>
      %24 = tpu.iota {dimensions = array<i32: 2>} : vector<1x8x128xi32>
      %c8_i32_11 = arith.constant 8 : i32
      %25 = arith.muli %c0_i32_4, %c8_i32_11 : i32
      %26 = arith.addi %5, %25 : i32
      %27 = vector.broadcast %26 : i32 to vector<1x8x128xi32>
      %28 = arith.addi %27, %23 : vector<1x8x128xi32>
      %c128_i32_12 = arith.constant 128 : i32
      %29 = vector.broadcast %c128_i32_12 : i32 to vector<1x8x128xi32>
      %30 = arith.muli %28, %29 : vector<1x8x128xi32>
      %31 = arith.addi %30, %24 : vector<1x8x128xi32>
      %c256_i32_13 = arith.constant 256 : i32
      %32 = vector.broadcast %c256_i32_13 : i32 to vector<1x8x128xi32>
      %33 = arith.cmpi slt, %31, %32 : vector<1x8x128xi32>
      %cst_14 = arith.constant 0.000000e+00 : f32
      %34 = vector.shape_cast %33 : vector<1x8x128xi1> to vector<1x8x128xi1>
      %35 = vector.broadcast %34 : vector<1x8x128xi1> to vector<4x8x128xi1>
      %36 = vector.broadcast %cst_14 : f32 to vector<4x8x128xf32>
      %37 = arith.select %35, %19, %36 : vector<4x8x128xi1>, vector<4x8x128xf32>
      %cst_15 = arith.constant dense<0xFF800000> : vector<8x128xf32>
      %38 = vector.multi_reduction <maximumf>, %37, %cst_15 [0] : vector<4x8x128xf32> to vector<8x128xf32>
      %39 = vector.shape_cast %38 : vector<8x128xf32> to vector<1x8x128xf32>
      %40 = vector.broadcast %39 : vector<1x8x128xf32> to vector<4x8x128xf32>
      %41 = arith.subf %37, %40 : vector<4x8x128xf32>
      %42 = math.exp %41 : vector<4x8x128xf32>
      %cst_16 = arith.constant dense<0.000000e+00> : vector<8x128xf32>
      %43 = vector.multi_reduction <add>, %42, %cst_16 [0] : vector<4x8x128xf32> to vector<8x128xf32>
      %44 = vector.shape_cast %43 : vector<8x128xf32> to vector<1x8x128xf32>
      %45 = tpu.reciprocal %44 {approx = true} : vector<1x8x128xf32> -> vector<1x8x128xf32>
      %46 = arith.mulf %44, %45 : vector<1x8x128xf32>
      %cst_17 = arith.constant 2.000000e+00 : f32
      %47 = vector.broadcast %cst_17 : f32 to vector<1x8x128xf32>
      %48 = arith.subf %47, %46 : vector<1x8x128xf32>
      %49 = arith.mulf %45, %48 : vector<1x8x128xf32>
      %50 = math.log %44 : vector<1x8x128xf32>
      %c-1_i32 = arith.constant -1 : i32
      %51 = vector.broadcast %c-1_i32 : i32 to vector<1x8x128xi32>
      %52 = arith.cmpi ne, %22, %51 : vector<1x8x128xi32>
      %cst_18 = arith.constant 0.000000e+00 : f32
      %53 = vector.broadcast %cst_18 : f32 to vector<1x8x128xf32>
      %54 = arith.select %33, %49, %53 : vector<1x8x128xi1>, vector<1x8x128xf32>
      %55 = arith.andi %52, %33 : vector<1x8x128xi1>
      %56 = tpu.iota {dimensions = array<i32: 0>} : vector<4x8x128xi32>
      %57 = vector.broadcast %22 : vector<1x8x128xi32> to vector<4x8x128xi32>
      %58 = arith.cmpi eq, %56, %57 : vector<4x8x128xi32>
      %59 = vector.broadcast %55 : vector<1x8x128xi1> to vector<4x8x128xi1>
      %60 = arith.andi %58, %59 : vector<4x8x128xi1>
      %61 = arith.extui %60 : vector<4x8x128xi1> to vector<4x8x128xi32>
      %62 = arith.sitofp %61 : vector<4x8x128xi32> to vector<4x8x128xf32>
      %63 = vector.broadcast %54 : vector<1x8x128xf32> to vector<4x8x128xf32>
      %64 = arith.mulf %42, %63 : vector<4x8x128xf32>
      %65 = arith.addf %14, %64 : vector<4x8x128xf32>
      %66 = vector.broadcast %50 : vector<1x8x128xf32> to vector<4x8x128xf32>
      %67 = arith.subf %66, %41 : vector<4x8x128xf32>
      %68 = arith.mulf %62, %67 : vector<4x8x128xf32>
      %69 = arith.addf %14, %68 : vector<4x8x128xf32>
      %70 = arith.addf %14, %62 : vector<4x8x128xf32>
      %c1_i32_19 = arith.constant 1 : i32
      %c0_20 = arith.constant 0 : index
      %c0_21 = arith.constant 0 : index
      %c0_22 = arith.constant 0 : index
      %c0_23 = arith.constant 0 : index
      %71 = vector.load %arg5[%c0_20, %c0_21, %c0_22, %c0_23] : memref<1x4x8x128xf32, #tpu.memory_space<vmem>>, vector<1x4x8x128xf32>
      %72 = vector.shape_cast %71 : vector<1x4x8x128xf32> to vector<4x8x128xf32>
      %73 = arith.addf %72, %65 : vector<4x8x128xf32>
      %c0_24 = arith.constant 0 : index
      %c0_25 = arith.constant 0 : index
      %c0_26 = arith.constant 0 : index
      %c0_27 = arith.constant 0 : index
      %74 = vector.load %arg5[%c0_24, %c0_25, %c0_26, %c0_27] : memref<1x4x8x128xf32, #tpu.memory_space<vmem>>, vector<1x4x8x128xf32>
      %75 = vector.shape_cast %74 : vector<1x4x8x128xf32> to vector<4x8x128xf32>
      %76 = vector.shape_cast %73 : vector<4x8x128xf32> to vector<1x4x8x128xf32>
      tpu.vector_store %arg5[%c0_24, %c0_25, %c0_26, %c0_27], %76 {strides = array<i32>} : memref<1x4x8x128xf32, #tpu.memory_space<vmem>>, vector<1x4x8x128xf32>,
      %c0_28 = arith.constant 0 : index
      %c0_29 = arith.constant 0 : index
      %c0_30 = arith.constant 0 : index
      %c0_31 = arith.constant 0 : index
      %77 = vector.load %arg6[%c0_28, %c0_29, %c0_30, %c0_31] : memref<1x4x8x128xf32, #tpu.memory_space<vmem>>, vector<1x4x8x128xf32>
      %78 = vector.shape_cast %77 : vector<1x4x8x128xf32> to vector<4x8x128xf32>
      %79 = arith.addf %78, %69 : vector<4x8x128xf32>
      %c0_32 = arith.constant 0 : index
      %c0_33 = arith.constant 0 : index
      %c0_34 = arith.constant 0 : index
      %c0_35 = arith.constant 0 : index
      %80 = vector.load %arg6[%c0_32, %c0_33, %c0_34, %c0_35] : memref<1x4x8x128xf32, #tpu.memory_space<vmem>>, vector<1x4x8x128xf32>
      %81 = vector.shape_cast %80 : vector<1x4x8x128xf32> to vector<4x8x128xf32>
      %82 = vector.shape_cast %79 : vector<4x8x128xf32> to vector<1x4x8x128xf32>
      tpu.vector_store %arg6[%c0_32, %c0_33, %c0_34, %c0_35], %82 {strides = array<i32>} : memref<1x4x8x128xf32, #tpu.memory_space<vmem>>, vector<1x4x8x128xf32>,
      %c0_36 = arith.constant 0 : index
      %c0_37 = arith.constant 0 : index
      %c0_38 = arith.constant 0 : index
      %c0_39 = arith.constant 0 : index
      %83 = vector.load %arg7[%c0_36, %c0_37, %c0_38, %c0_39] : memref<1x4x8x128xf32, #tpu.memory_space<vmem>>, vector<1x4x8x128xf32>
      %84 = vector.shape_cast %83 : vector<1x4x8x128xf32> to vector<4x8x128xf32>
      %85 = arith.addf %84, %70 : vector<4x8x128xf32>
      %c0_40 = arith.constant 0 : index
      %c0_41 = arith.constant 0 : index
      %c0_42 = arith.constant 0 : index
      %c0_43 = arith.constant 0 : index
      %86 = vector.load %arg7[%c0_40, %c0_41, %c0_42, %c0_43] : memref<1x4x8x128xf32, #tpu.memory_space<vmem>>, vector<1x4x8x128xf32>
      %87 = vector.shape_cast %86 : vector<1x4x8x128xf32> to vector<4x8x128xf32>
      %88 = vector.shape_cast %85 : vector<4x8x128xf32> to vector<1x4x8x128xf32>
      tpu.vector_store %arg7[%c0_40, %c0_41, %c0_42, %c0_43], %88 {strides = array<i32>} : memref<1x4x8x128xf32, #tpu.memory_space<vmem>>, vector<1x4x8x128xf32>,
    } else {
    }
    return
  }
  func.func @transform_0(%arg0: i32, %arg1: i32, %arg2: i32) -> (i32, i32, i32, i32) {
    %c1_i32 = arith.constant 1 : i32
    %0 = arith.muli %arg1, %c1_i32 : i32
    %1 = arith.addi %0, %arg2 : i32
    %c0_i32 = arith.constant 0 : i32
    %c0_i32_0 = arith.constant 0 : i32
    %c0_i32_1 = arith.constant 0 : i32
    return %arg0, %c0_i32, %1, %c0_i32_0 : i32, i32, i32, i32
  }
  func.func @transform_1(%arg0: i32, %arg1: i32, %arg2: i32) -> (i32, i32, i32, i32) {
    %c1_i32 = arith.constant 1 : i32
    %0 = arith.muli %arg1, %c1_i32 : i32
    %1 = arith.addi %0, %arg2 : i32
    %c0_i32 = arith.constant 0 : i32
    %c0_i32_0 = arith.constant 0 : i32
    %c0_i32_1 = arith.constant 0 : i32
    return %arg0, %c0_i32, %1, %c0_i32_0 : i32, i32, i32, i32
  }
  func.func @transform_2(%arg0: i32, %arg1: i32, %arg2: i32) -> (i32, i32, i32, i32) {
    %c1_i32 = arith.constant 1 : i32
    %0 = arith.muli %arg0, %c1_i32 : i32
    %1 = arith.addi %0, %arg1 : i32
    %c0_i32 = arith.constant 0 : i32
    %c0_i32_0 = arith.constant 0 : i32
    %c0_i32_1 = arith.constant 0 : i32
    %c0_i32_2 = arith.constant 0 : i32
    return %1, %c0_i32, %c0_i32_0, %c0_i32_1 : i32, i32, i32, i32
  }
  func.func @transform_3(%arg0: i32, %arg1: i32, %arg2: i32) -> (i32, i32, i32, i32) {
    %c1_i32 = arith.constant 1 : i32
    %0 = arith.muli %arg0, %c1_i32 : i32
    %1 = arith.addi %0, %arg1 : i32
    %c0_i32 = arith.constant 0 : i32
    %c0_i32_0 = arith.constant 0 : i32
    %c0_i32_1 = arith.constant 0 : i32
    %c0_i32_2 = arith.constant 0 : i32
    return %1, %c0_i32, %c0_i32_0, %c0_i32_1 : i32, i32, i32, i32
  }
  func.func @transform_4(%arg0: i32, %arg1: i32, %arg2: i32) -> (i32, i32, i32, i32) {
    %c1_i32 = arith.constant 1 : i32
    %0 = arith.muli %arg0, %c1_i32 : i32
    %1 = arith.addi %0, %arg1 : i32
    %c0_i32 = arith.constant 0 : i32
    %c0_i32_0 = arith.constant 0 : i32
    %c0_i32_1 = arith.constant 0 : i32
    %c0_i32_2 = arith.constant 0 : i32
    return %1, %c0_i32, %c0_i32_0, %c0_i32_1 : i32, i32, i32, i32
  }
}

</mosaic_0001>

<bundles_post_ra>
// kernel: weighted_cross_entropy_loss.1
= control target key start
LH: loop header
LB: loop body
LE: loop exit
PB: predicated region body
PF: predicated region fallthrough
CT: control target
= control target key end

     0   :  { %s849_s15 = smov 0   ;;  %s851_s16 = smov 0   ;;  %s924_s0 = inlined_call_operand.vmem [shape: f32[2,4,8,128], index: 0, kind: input, shape index: {}]   ;;  %s925_s1 = inlined_call_operand.vmem [shape: s32[2,1,8,128], index: 1, kind: input, shape index: {}]   ;;  %s926_s2 = inlined_call_operand.vmem [shape: f32[2,4,8,128], index: 2, kind: output, shape index: {0}]   ;;  %s927_s3 = inlined_call_operand.vmem [shape: f32[2,4,8,128], index: 3, kind: output, shape index: {1}]   ;;  %s928_s4 = inlined_call_operand.vmem [shape: f32[2,4,8,128], index: 4, kind: output, shape index: {2}]  }
   0x1   :  { %s853_s17 = smov 0  }
   0x2 LB: > { %s34_s18 = sadd.s32 1, %s817_s16  ;;  %p738_p0 = scmp.ge.s32.totalorder %s821_s17, 1  ;;  %s821_s17 = sphi %s853_s17, %s15_s17   ;;  %s817_s16 = sphi %s851_s16, %s932_s16   ;;  %s813_s15 = sphi %s849_s15, %s931_s15  }
   0x3   : > { %p36_p1 = scmp.ge.s32.totalorder %s34_s18, 2  ;;  %p219_p2 = scmp.lt.s32.totalorder %s821_s17, 3 }
   0x5   : > { %s934_s18 = smov (%p36_p1, %s34_s18), 0  ;;  %p220_p3 = pnand %p738_p0, %p219_p2 }
   0x6   : > { %p271_p4 = scmp.lt.s32.totalorder (!%p220_p3), %s813_s15, 1  ;;  %v451_v0 = vlaneseq (!%p220_p3)  ;;  %v823_v18 = vmov (!%p220_p3), 0.0  }
   0x7   : > { %223 = sbr.rel (%p220_p3) target bundleno = 69 (0x45), region = 28 }
   0x8   : > { %v452_v1 = vshrl.u32 (!%p220_p3), %v451_v0, 7  ;;  %v454_v2 = vand.u32 (!%p220_p3), 127, %v451_v0 }
   0xa   : > { %v457_v3 = vmul.u32 (!%p220_p3), 128, %v452_v1 }
   0xc   : > { %v873_v4 = vadd.s32 (!%p220_p3), %v457_v3, %v454_v2 }
   0xe   : > { %s936_s15 = smov (!%p271_p4, %s813_s15), 1  ;;  %vm459_vm0 = vcmp.lt.s32.totalorder %v873_v4, 256 }
   0xf   : > { %s867_s19 = sshll.u32 %s936_s15, 5  ;;  %s741_s20 = sshll.u32 %s936_s15, 3 }
  0x10   : > { %s278_s23 = scalar_lea.vmem %s924_s0, %s867_s19  ;;  %s287_s26 = scalar_lea.vmem %s925_s1, %s741_s20 }
  0x11   : > { %v446_v5 = vld [vmem:[%s278_s23] sm:$0xff]  ;;  %v447_v6 = vld [vmem:[%s278_s23 + $0x8] sm:$0xff]  ;;  %v448_v7 = vld [vmem:[%s278_s23 + $0x10] sm:$0xff]  ;;  %s308_s29 = scalar_lea.vmem %s928_s4, %s867_s19  ;;  %s301_s6 = scalar_lea.vmem %s927_s3, %s867_s19 }
  0x12   : > { %v449_v8 = vld [vmem:[%s278_s23 + $0x18] sm:$0xff]  ;;  %v450_v9 = vld [vmem:[%s287_s26] sm:$0xff]  ;;  %v462_v10 = vsel %vm459_vm0, %v446_v5, 0.0  ;;  %v463_v11 = vsel %vm459_vm0, %v447_v6, 0.0  ;;  %v464_v12 = vsel %vm459_vm0, %v448_v7, 0.0  ;;  %s294_s9 = scalar_lea.vmem %s926_s2, %s867_s19 }
  0x13   : > { %v465_v13 = vsel %vm459_vm0, %v449_v8, 0.0  ;;  %v466_v14 = vmax.f32 %v462_v10, %v463_v11  ;;  %vm490_vm1 = vcmp.ne.s32.totalorder %v450_v9, 4294967295  ;;  %vm493_vm2 = vcmp.eq.s32.totalorder %v450_v9, 0 }
  0x14   : > { %v467_v15 = vmax.f32 %v464_v12, %v465_v13  ;;  %vm889_vm3 = vmand %vm490_vm1, %vm459_vm0  ;;  %vm494_vm4 = vcmp.eq.s32.totalorder %v450_v9, 1  ;;  %vm495_vm5 = vcmp.eq.s32.totalorder %v450_v9, 2  ;;  %vm496_vm7 = vcmp.eq.s32.totalorder %v450_v9, 3 }
  0x15   : > { %vm499_vm6 = vmand %vm493_vm2, %vm889_vm3 }
  0x16   : > { %v468_v17 = vmax.f32 %v466_v14, %v467_v15  ;;  %v752_v19 = vsel %vm499_vm6, 1.0, %v823_v18  ;;  %vm500_vm8 = vmand %vm494_vm4, %vm889_vm3 }
  0x17   : > { %vm501_vm9 = vmand %vm495_vm5, %vm889_vm3  ;;  %v753_v24 = vsel %vm500_vm8, 1.0, %v823_v18  ;;  %567 = vst [vmem:[%s308_s29] sm:$0xff] %v752_v19 }
  0x18   : > { %v469_v20 = vsub.f32 %v462_v10, %v468_v17  ;;  %v470_v21 = vsub.f32 %v463_v11, %v468_v17  ;;  %v471_v22 = vsub.f32 %v464_v12, %v468_v17  ;;  %v472_v23 = vsub.f32 %v465_v13, %v468_v17  ;;  %vm502_vm10 = vmand %vm496_vm7, %vm889_vm3  ;;  %568 = vst [vmem:[%s308_s29 + $0x8] sm:$0xff] %v753_v24 }
  0x19   : > { %v754_v25 = vsel %vm501_vm9, 1.0, %v823_v18  ;;  %v755_v30 = vsel %vm502_vm10, 1.0, %v823_v18 }
  0x1a   : > { %v473_v26 = vmul.f32 1.442695, %v469_v20  ;;  %v475_v27 = vmul.f32 1.442695, %v470_v21  ;;  %v477_v28 = vmul.f32 1.442695, %v471_v22 }
  0x1b   : > { %v479_v29 = vmul.f32 1.442695, %v472_v23  ;;  %569 = vst [vmem:[%s308_s29 + $0x10] sm:$0xff] %v754_v25  ;;  %570 = vst [vmem:[%s308_s29 + $0x18] sm:$0xff] %v755_v30 }
  0x1c   : > { %787 = vpow2.f32 %v473_v26 }
  0x1d   : > { %789 = vpow2.f32 %v475_v27 }
  0x1e   : > { %791 = vpow2.f32 %v477_v28 }
  0x1f   : > { %793 = vpow2.f32 %v479_v29 }
  0x26   : > { %v788_v31 = vpop.eup %787 }
  0x27   : > { %v790_v32 = vpop.eup %789 }
  0x28   : > { %v792_v33 = vpop.eup %791  ;;  %v481_v34 = vadd.f32 %v790_v32, %v788_v31 }
  0x29   : > { %v794_v35 = vpop.eup %793 }
  0x2a   : > { %v482_v36 = vadd.f32 %v792_v33, %v481_v34 }
  0x2c   : > { %v483_v37 = vadd.f32 %v794_v35, %v482_v36 }
  0x2e   : > { %795 = vrcp.f32 %v483_v37 }
  0x2f   : > { %797 = vlog2.f32 %v483_v37 }
  0x38   : > { %v796_v38 = vpop.eup %795 }
  0x39   : > { %v798_v39 = vpop.eup %797  ;;  %v485_v40 = vmul.f32 %v796_v38, %v483_v37 }
  0x3a   : > { %v489_v41 = vmul.f32 0.6931472, %v798_v39 }
  0x3b   : > { %v486_v42 = vsub.f32 2.0, %v485_v40 }
  0x3c   : > { %v519_v43 = vsub.f32 %v489_v41, %v469_v20  ;;  %v520_v44 = vsub.f32 %v489_v41, %v470_v21  ;;  %v521_v45 = vsub.f32 %v489_v41, %v471_v22  ;;  %v522_v46 = vsub.f32 %v489_v41, %v472_v23 }
  0x3d   : > { %v487_v47 = vmul.f32 %v796_v38, %v486_v42 }
  0x3e   : > { %v523_v48 = vmul.f32 %v752_v19, %v519_v43  ;;  %v524_v49 = vmul.f32 %v753_v24, %v520_v44  ;;  %v525_v50 = vmul.f32 %v754_v25, %v521_v45  ;;  %v526_v51 = vmul.f32 %v755_v30, %v522_v46 }
  0x3f   : > { %v491_v52 = vsel %vm459_vm0, %v487_v47, 0.0 }
  0x40   : > { %v511_v53 = vmul.f32 %v788_v31, %v491_v52  ;;  %v512_v54 = vmul.f32 %v790_v32, %v491_v52  ;;  %v513_v55 = vmul.f32 %v792_v33, %v491_v52  ;;  %v514_v56 = vmul.f32 %v794_v35, %v491_v52  ;;  %555 = vst [vmem:[%s301_s6] sm:$0xff] %v523_v48 }
  0x41   : > { %556 = vst [vmem:[%s301_s6 + $0x8] sm:$0xff] %v524_v49  ;;  %557 = vst [vmem:[%s301_s6 + $0x10] sm:$0xff] %v525_v50 }
  0x42   : > { %558 = vst [vmem:[%s301_s6 + $0x18] sm:$0xff] %v526_v51  ;;  %543 = vst [vmem:[%s294_s9] sm:$0xff] %v511_v53 }
  0x43   : > { %544 = vst [vmem:[%s294_s9 + $0x8] sm:$0xff] %v512_v54  ;;  %545 = vst [vmem:[%s294_s9 + $0x10] sm:$0xff] %v513_v55 }
  0x44   : > { %546 = vst [vmem:[%s294_s9 + $0x18] sm:$0xff] %v514_v56 }
  0x45 PF: > { %s15_s17 = sadd.s32 1, %s821_s17   ;;  %s931_s15 = smov %s817_s16 }
  0x46   : > { %p12_p5 = scmp.ge.s32.totalorder %s15_s17, 4   ;;  %s932_s16 = smov %s934_s18 }
  0x48   :  { %14 = sbr.rel (!%p12_p5) target bundleno = 2 (0x2), region = 97 }

</bundles_post_ra>
